<compile_context>
chip_gen: v7x
topology: tpu7x:2x2x1
jax: 0.10.0
libtpu: 0.0.40
codegen_flags: <defaults>
</compile_context>

<pallas_src>
import functools
import math

import jax
import jax.numpy as jnp
from jax.experimental import pallas as pl
from jax.experimental.pallas import tpu as pltpu


def _residual2_kernel(x_lhs_ref, w_ref, m_ref, x_res_ref, o_ref, acc_ref,
                      *, mxu_bf16):
    k = pl.program_id(2)

    @pl.when(k == 0)
    def _():
        acc_ref[...] = jnp.zeros_like(acc_ref)

    x_blk = x_lhs_ref[...]
    w_blk = w_ref[...]
    if mxu_bf16:
        # Feed the MXU bf16 operands, keep f32 accumulation.
        x_blk = x_blk.astype(jnp.bfloat16)
        w_blk = w_blk.astype(jnp.bfloat16)
    acc_ref[...] += jnp.dot(x_blk, w_blk, preferred_element_type=jnp.float32)

    @pl.when(k == pl.num_programs(2) - 1)
    def _():
        # Residual2 epilogue:  fn(x, m) + x  ==  (x @ W) + m + x
        res = acc_ref[...] + (m_ref[...].astype(jnp.float32)
                              + x_res_ref[...].astype(jnp.float32))
        o_ref[...] = res.astype(o_ref.dtype)


def _round_up(n, mult):
    return ((n + mult - 1) // mult) * mult


def _pad2d(a, rows, cols):
    r, c = a.shape
    if (r, c) == (rows, cols):
        return a
    return jnp.pad(a, ((0, rows - r), (0, cols - c)))


def residual2(x, m, w, *, tm=256, tn=512, tk=512, mxu_bf16=False):
    """out = fn(x, m) + x with fn(x, m) = x @ W + m, fused + tiled on TPU."""
    B, S, D = x.shape
    assert m.shape == (B, S, D) and w.shape == (D, D)
    rows = B * S

    # Shrink tiles for small problems while keeping (8, 128) alignment.
    tm = min(tm, _round_up(rows, 8))
    tn = min(tn, _round_up(D, 128))
    tk = min(tk, _round_up(D, 128))

    rows_p = _round_up(rows, tm)
    d_p = _round_up(D, math.lcm(tn, tk))

    x2 = _pad2d(x.reshape(rows, D), rows_p, d_p)
    m2 = _pad2d(m.reshape(rows, D), rows_p, d_p)
    w2 = _pad2d(w, d_p, d_p)

    grid = (rows_p // tm, d_p // tn, d_p // tk)

    itemsize = jnp.dtype(x.dtype).itemsize
    cost = pl.CostEstimate(
        flops=2 * rows_p * d_p * d_p,
        transcendentals=0,
        bytes_accessed=(3 * rows_p * d_p + d_p * d_p) * itemsize,
    )

    kernel = functools.partial(_residual2_kernel, mxu_bf16=mxu_bf16)

    out_p = pl.pallas_call(
        kernel,
        out_shape=jax.ShapeDtypeStruct((rows_p, d_p), x.dtype),
        grid_spec=pltpu.PrefetchScalarGridSpec(
            num_scalar_prefetch=0,
            grid=grid,
            in_specs=[
                pl.BlockSpec((tm, tk), lambda i, j, k: (i, k)),  # x (MXU LHS)
                pl.BlockSpec((tk, tn), lambda i, j, k: (k, j)),  # W (K-sliced)
                pl.BlockSpec((tm, tn), lambda i, j, k: (i, j)),  # m (epilogue)
                pl.BlockSpec((tm, tn), lambda i, j, k: (i, j)),  # x (residual)
            ],
            out_specs=pl.BlockSpec((tm, tn), lambda i, j, k: (i, j)),
            scratch_shapes=[pltpu.VMEM((tm, tn), jnp.float32)],
        ),
        compiler_params=pltpu.CompilerParams(
            dimension_semantics=("parallel", "parallel", "arbitrary"),
            vmem_limit_bytes=32 * 1024 * 1024,  # safe on v5e/v6e/v7x
        ),
        cost_estimate=cost,
    )(x2, w2, m2, x2)

    return out_p[:rows, :D].reshape(B, S, D)


def residual2_ref(x, m, w):
    return jnp.einsum("bsd,de->bse", x, w) + m + x


if __name__ == "__main__":
    key = jax.random.PRNGKey(0)

    def run_case(B, S, D):
        kx, km, kw = jax.random.split(jax.random.fold_in(key, B * S * D), 3)
        x = jax.random.normal(kx, (B, S, D), dtype=jnp.float32)
        m = jax.random.normal(km, (B, S, D), dtype=jnp.float32)
        # deterministic "fn" parameter (the wrapped module's weight)
        w = jax.random.normal(kw, (D, D), dtype=jnp.float32) * 0.02

        out = jax.block_until_ready(residual2(x, m, w))
        ref = residual2_ref(x, m, w)
        assert out.shape == (B, S, D)
        err = float(jnp.max(jnp.abs(out - ref)))
        assert jnp.allclose(out, ref, atol=2e-3, rtol=2e-3), err

    # Tiled, lane-aligned case (exercises the (TM, TN, TK) grid + epilogue).
    run_case(2, 64, 256)
    # Tiny unaligned case (exercises the zero-padding path).
    run_case(2, 8, 32)

    print("KERNEL_OK")
</pallas_src>

<mosaic_0001>
module attributes {stable_mosaic.version = 11 : i64} {
  func.func @_residual2_kernel(%arg0: i32, %arg1: i32, %arg2: i32, %arg3: memref<128x256xf32, #tpu.memory_space<vmem>>, %arg4: memref<256x256xf32, #tpu.memory_space<vmem>>, %arg5: memref<128x256xf32, #tpu.memory_space<vmem>>, %arg6: memref<128x256xf32, #tpu.memory_space<vmem>>, %arg7: memref<128x256xf32, #tpu.memory_space<vmem>>, %arg8: memref<128x256xf32, #tpu.memory_space<vmem>>) attributes {dimension_semantics = [#tpu.dimension_semantics<parallel>, #tpu.dimension_semantics<parallel>, #tpu.dimension_semantics<arbitrary>], iteration_bounds = array<i64: 1, 1, 1>, scalar_prefetch = 0 : i64, scratch_operands = 1 : i64, tpu.core_type = #tpu.core_type<tc>, window_params = [{transform_indices = @transform_0, window_bounds = array<i64: 128, 256>}, {transform_indices = @transform_1, window_bounds = array<i64: 256, 256>}, {transform_indices = @transform_2, window_bounds = array<i64: 128, 256>}, {transform_indices = @transform_3, window_bounds = array<i64: 128, 256>}, {transform_indices = @transform_4, window_bounds = array<i64: 128, 256>}]} {
    %c0_i32 = arith.constant 0 : i32
    %0 = arith.cmpi eq, %arg2, %c0_i32 : i32
    %1 = arith.extui %0 : i1 to i32
    %c0_i32_0 = arith.constant 0 : i32
    %2 = arith.cmpi ne, %1, %c0_i32_0 : i32
    scf.if %2 {
      %cst_10 = arith.constant 0.000000e+00 : f32
      %12 = vector.broadcast %cst_10 : f32 to vector<128x256xf32>
      %c0_11 = arith.constant 0 : index
      %c0_12 = arith.constant 0 : index
      %13 = vector.load %arg8[%c0_11, %c0_12] : memref<128x256xf32, #tpu.memory_space<vmem>>, vector<128x256xf32>
      tpu.vector_store %arg8[%c0_11, %c0_12], %12 {strides = array<i32>} : memref<128x256xf32, #tpu.memory_space<vmem>>, vector<128x256xf32>,
    } else {
    }
    %c0 = arith.constant 0 : index
    %c0_1 = arith.constant 0 : index
    %3 = vector.load %arg3[%c0, %c0_1] : memref<128x256xf32, #tpu.memory_space<vmem>>, vector<128x256xf32>
    %c0_2 = arith.constant 0 : index
    %c0_3 = arith.constant 0 : index
    %4 = vector.load %arg4[%c0_2, %c0_3] : memref<256x256xf32, #tpu.memory_space<vmem>>, vector<256x256xf32>
    %c0_4 = arith.constant 0 : index
    %c0_5 = arith.constant 0 : index
    %5 = vector.load %arg8[%c0_4, %c0_5] : memref<128x256xf32, #tpu.memory_space<vmem>>, vector<128x256xf32>
    %cst = arith.constant dense<0.000000e+00> : vector<128x256xf32>
    %6 = tpu.matmul %3, %4, %cst {dimension_numbers = #tpu.dot_dimension_numbers<[1], [0], [0], [1], [0, 0, 1, 1], [], []>} : vector<128x256xf32>, vector<256x256xf32>, vector<128x256xf32> -> vector<128x256xf32>
    %7 = arith.addf %5, %6 : vector<128x256xf32>
    %c0_6 = arith.constant 0 : index
    %c0_7 = arith.constant 0 : index
    %8 = vector.load %arg8[%c0_6, %c0_7] : memref<128x256xf32, #tpu.memory_space<vmem>>, vector<128x256xf32>
    tpu.vector_store %arg8[%c0_6, %c0_7], %7 {strides = array<i32>} : memref<128x256xf32, #tpu.memory_space<vmem>>, vector<128x256xf32>,
    %c0_i32_8 = arith.constant 0 : i32
    %9 = arith.cmpi eq, %arg2, %c0_i32_8 : i32
    %10 = arith.extui %9 : i1 to i32
    %c0_i32_9 = arith.constant 0 : i32
    %11 = arith.cmpi ne, %10, %c0_i32_9 : i32
    scf.if %11 {
      %c0_10 = arith.constant 0 : index
      %c0_11 = arith.constant 0 : index
      %12 = vector.load %arg8[%c0_10, %c0_11] : memref<128x256xf32, #tpu.memory_space<vmem>>, vector<128x256xf32>
      %c0_12 = arith.constant 0 : index
      %c0_13 = arith.constant 0 : index
      %13 = vector.load %arg5[%c0_12, %c0_13] : memref<128x256xf32, #tpu.memory_space<vmem>>, vector<128x256xf32>
      %c0_14 = arith.constant 0 : index
      %c0_15 = arith.constant 0 : index
      %14 = vector.load %arg6[%c0_14, %c0_15] : memref<128x256xf32, #tpu.memory_space<vmem>>, vector<128x256xf32>
      %15 = arith.addf %13, %14 : vector<128x256xf32>
      %16 = arith.addf %12, %15 : vector<128x256xf32>
      %c0_16 = arith.constant 0 : index
      %c0_17 = arith.constant 0 : index
      %17 = vector.load %arg7[%c0_16, %c0_17] : memref<128x256xf32, #tpu.memory_space<vmem>>, vector<128x256xf32>
      tpu.vector_store %arg7[%c0_16, %c0_17], %16 {strides = array<i32>} : memref<128x256xf32, #tpu.memory_space<vmem>>, vector<128x256xf32>,
    } else {
    }
    return
  }
  func.func @transform_0(%arg0: i32, %arg1: i32, %arg2: i32) -> (i32, i32) {
    %c0_i32 = arith.constant 0 : i32
    return %arg0, %arg2 : i32, i32
  }
  func.func @transform_1(%arg0: i32, %arg1: i32, %arg2: i32) -> (i32, i32) {
    %c0_i32 = arith.constant 0 : i32
    return %arg2, %arg1 : i32, i32
  }
  func.func @transform_2(%arg0: i32, %arg1: i32, %arg2: i32) -> (i32, i32) {
    %c0_i32 = arith.constant 0 : i32
    return %arg0, %arg1 : i32, i32
  }
  func.func @transform_3(%arg0: i32, %arg1: i32, %arg2: i32) -> (i32, i32) {
    %c0_i32 = arith.constant 0 : i32
    return %arg0, %arg1 : i32, i32
  }
  func.func @transform_4(%arg0: i32, %arg1: i32, %arg2: i32) -> (i32, i32) {
    %c0_i32 = arith.constant 0 : i32
    return %arg0, %arg1 : i32, i32
  }
}

</mosaic_0001>

<bundles_post_ra>
// kernel: tpu_custom_call.1
= control target key start
LH: loop header
LB: loop body
LE: loop exit
PB: predicated region body
PF: predicated region fallthrough
CT: control target
= control target key end

     0   :  { %9 = vsyncpa [#allocation4], 0  ;;  %s1018_s0 = inlined_call_operand.hbm [shape: f32[128,256], index: 0, kind: input, shape index: {}]   ;;  %s1019_s1 = inlined_call_operand.hbm [shape: f32[256,256], index: 1, kind: input, shape index: {}]   ;;  %s1020_s2 = inlined_call_operand.hbm [shape: f32[128,256], index: 2, kind: input, shape index: {}]   ;;  %s1021_s3 = inlined_call_operand.hbm [shape: f32[128,256], index: 3, kind: input, shape index: {}]   ;;  %s1022_s4 = inlined_call_operand.hbm [shape: f32[128,256], index: 4, kind: output, shape index: {}]  }
   0x1   :  { %10 = vsyncpa [#allocation7], 0 }
   0x2   :  { %11 = vsyncpa [#allocation10], 0 }
   0x3   :  { %12 = vsyncpa [#allocation5], 0  ;;  %s897_s15 = smov [#allocation6]   ;;  %s898_s17 = smov [#allocation3]  }
   0x4   :  { %s30_s16 = sshll.u32 %s897_s15, 4  ;;  %s18_s18 = sshll.u32 %s898_s17, 4  ;;  %s31_s16 = int_to_ptr.vmem [resolvable:$true] %s30_s16  ;;  %s929_s18 = int_to_ptr.vmem [resolvable:$true] %s18_s18 }
   0x5   :  { %s779_s21 = scalar_lea.hbm %s1019_s1, 8192 }
   0x6   :  { %p780_p0 = scmp.ne.s32.totalorder %s1019_s1, %s779_s21  ;;  %p783_p1 = scmp.lt.u32.totalorder %s779_s21, %s1019_s1 }
   0x8   :  { %p785_p2 = pnand %p783_p1, %p780_p0 }
   0xa   :  { %788 = shalt.err (!%p785_p2)
}
   0xb   :  { %s789_s26 = scalar_lea.vmem %s31_s16, 8192  ;;  %p794_p4 = scmp.lt.s32.totalorder %s31_s16, %s31_s16 }
   0xc   :  { %p790_p3 = scmp.ne.s32.totalorder %s31_s16, %s789_s26  ;;  %p795_p5 = scmp.lt.s32.totalorder %s789_s26, %s789_s26 }
   0xe   :  { %p796_p6 = por %p795_p5, %p794_p4 }
  0x10   :  { %p797_p7 = pnand %p796_p6, %p790_p3 }
  0x12   :  { %800 = shalt.err (!%p797_p7)
}
  0x13   :  { %s899_s27 = smov 256   ;;  %s900_s28 = smov 16  }
  0x14   :  { %36 = dma.hbm_to_vmem [thread:$0]  %s1019_s1, 8192, %s31_s16, [#allocation7], %s899_s27, %s899_s27, %s900_s28  }
  0x15   :  { %s801_s7 = scalar_lea.hbm %s1018_s0, 4096 }
  0x16   :  { %p802_p8 = scmp.ne.s32.totalorder %s1018_s0, %s801_s7  ;;  %p805_p9 = scmp.lt.u32.totalorder %s801_s7, %s1018_s0 }
  0x18   :  { %p807_p10 = pnand %p805_p9, %p802_p8 }
  0x1a   :  { %810 = shalt.err (!%p807_p10)
}
  0x1b   :  { %s811_s12 = scalar_lea.vmem %s929_s18, 4096  ;;  %p816_p12 = scmp.lt.s32.totalorder %s929_s18, %s929_s18 }
  0x1c   :  { %p812_p11 = scmp.ne.s32.totalorder %s929_s18, %s811_s12  ;;  %p817_p13 = scmp.lt.s32.totalorder %s811_s12, %s811_s12 }
  0x1e   :  { %p818_p0 = por %p817_p13, %p816_p12 }
  0x20   :  { %p819_p1 = pnand %p818_p0, %p812_p11 }
  0x22   :  { %822 = shalt.err (!%p819_p1)
}
  0x23   :  { %24 = dma.hbm_to_vmem [thread:$0]  %s1018_s0, 4096, %s929_s18, [#allocation4], %s899_s27, %s899_s27, %s900_s28  }
  0x24   :  { %s901_s14 = smov [#allocation8]   ;;  %s902_s16 = smov [#allocation9]  }
  0x25   :  { %s42_s15 = sshll.u32 %s901_s14, 4  ;;  %s54_s17 = sshll.u32 %s902_s16, 4  ;;  %s43_s15 = int_to_ptr.vmem [resolvable:$true] %s42_s15  ;;  %s966_s17 = int_to_ptr.vmem [resolvable:$true] %s54_s17 }
  0x26   :  { %s823_s21 = scalar_lea.hbm %s1020_s2, 4096 }
  0x27   :  { %p824_p2 = scmp.ne.s32.totalorder %s1020_s2, %s823_s21  ;;  %p827_p3 = scmp.lt.u32.totalorder %s823_s21, %s1020_s2 }
  0x29   :  { %p829_p4 = pnand %p827_p3, %p824_p2 }
  0x2b   :  { %832 = shalt.err (!%p829_p4)
}
  0x2c   :  { %s833_s0 = scalar_lea.vmem %s43_s15, 4096  ;;  %p838_p6 = scmp.lt.s32.totalorder %s43_s15, %s43_s15 }
  0x2d   :  { %p834_p5 = scmp.ne.s32.totalorder %s43_s15, %s833_s0  ;;  %p839_p7 = scmp.lt.s32.totalorder %s833_s0, %s833_s0 }
  0x2f   :  { %p840_p8 = por %p839_p7, %p838_p6 }
  0x31   :  { %p841_p9 = pnand %p840_p8, %p834_p5 }
  0x33   :  { %844 = shalt.err (!%p841_p9)
}
  0x34   :  { %48 = dma.hbm_to_vmem [thread:$0]  %s1020_s2, 4096, %s43_s15, [#allocation7], %s899_s27, %s899_s27, %s900_s28  }
  0x35   :  { %s845_s5 = scalar_lea.hbm %s1021_s3, 4096 }
  0x36   :  { %p846_p10 = scmp.ne.s32.totalorder %s1021_s3, %s845_s5  ;;  %p849_p11 = scmp.lt.u32.totalorder %s845_s5, %s1021_s3 }
  0x38   :  { %p851_p12 = pnand %p849_p11, %p846_p10 }
  0x3a   :  { %854 = shalt.err (!%p851_p12)
}
  0x3b   :  { %s855_s10 = scalar_lea.vmem %s966_s17, 4096  ;;  %p860_p0 = scmp.lt.s32.totalorder %s966_s17, %s966_s17 }
  0x3c   :  { %p856_p13 = scmp.ne.s32.totalorder %s966_s17, %s855_s10  ;;  %p861_p1 = scmp.lt.s32.totalorder %s855_s10, %s855_s10 }
  0x3e   :  { %p862_p2 = por %p861_p1, %p860_p0 }
  0x40   :  { %p863_p3 = pnand %p862_p2, %p856_p13 }
  0x42   :  { %866 = shalt.err (!%p863_p3)
}
  0x43   :  { %60 = dma.hbm_to_vmem [thread:$0]  %s1021_s3, 4096, %s966_s17, [#allocation10], %s899_s27, %s899_s27, %s900_s28  }
  0x44   :  { %889 = dma.done.wait [#allocation4], 4096  }
  0x45   :  { %890 = vsyncadd [#allocation4], 4294963200 }
  0x46   :  { %891 = dma.done.wait [#allocation7], 12288  }
  0x47   :  { %892 = vsyncadd [#allocation7], 4294955008 }
  0x48   :  { %893 = dma.done.wait [#allocation10], 4096  }
  0x49   :  { %894 = vsyncadd [#allocation10], 4294963200  ;;  %v142_v0 = vld [vmem:[#allocation6 + $0x8] sm:$0xff]  ;;  %v144_v1 = vld [vmem:[#allocation6 + $0x18] sm:$0xff]  ;;  %s903_s3 = smov [#allocation11]  }
  0x4a   :  { %v141_v2 = vld [vmem:[#allocation6] sm:$0xff]  ;;  %v676_v3 = vpack.c.bf16 %v144_v1, %v142_v0  ;;  %v143_v4 = vld [vmem:[#allocation6 + $0x10] sm:$0xff]  ;;  %v146_v5 = vld [vmem:[#allocation6 + $0x28] sm:$0xff]  ;;  %s662_s12 = sshll.u32 %s903_s3, 4  ;;  %s663_s12 = int_to_ptr.vmem [resolvable:$true] %s662_s12 }
  0x4b   :  { %v148_v6 = vld [vmem:[#allocation6 + $0x38] sm:$0xff]  ;;  %v678_v7 = vpack.c.bf16 %v143_v4, %v141_v2  ;;  %v145_v9 = vld [vmem:[#allocation6 + $0x20] sm:$0xff]  ;;  %v147_v10 = vld [vmem:[#allocation6 + $0x30] sm:$0xff]  ;;  %s867_s1 = scalar_lea.vmem %s663_s12, 4096  ;;  %p872_p5 = scmp.lt.s32.totalorder %s663_s12, %s663_s12 }
  0x4c   :  { %v680_v8 = vpack.c.bf16 %v148_v6, %v146_v5  ;;  %v150_v11 = vld [vmem:[#allocation6 + $0x48] sm:$0xff]  ;;  %677 = vmatprep.subr.bf16.mxu0 %v676_v3  ;;  %740 = vmatprep.subr.bf16.mxu1 %v676_v3  ;;  %v152_v12 = vld [vmem:[#allocation6 + $0x58] sm:$0xff]  ;;  %v682_v13 = vpack.c.bf16 %v147_v10, %v145_v9  ;;  %v149_v15 = vld [vmem:[#allocation6 + $0x40] sm:$0xff]  ;;  %p868_p4 = scmp.ne.s32.totalorder %s663_s12, %s867_s1  ;;  %p873_p6 = scmp.lt.s32.totalorder %s867_s1, %s867_s1 }
  0x4d   :  { %679 = vmatpush1.bf16.msra.mxu0 %v678_v7  ;;  %756 = vmatpush1.bf16.msra.mxu1 %v678_v7  ;;  %v684_v14 = vpack.c.bf16 %v152_v12, %v150_v11  ;;  %v151_v16 = vld [vmem:[#allocation6 + $0x50] sm:$0xff]  ;;  %v154_v17 = vld [vmem:[#allocation6 + $0x68] sm:$0xff]  ;;  %v156_v18 = vld [vmem:[#allocation6 + $0x78] sm:$0xff] }
  0x4e   :  { %681 = vmatprep.subr.bf16.mxu0 %v680_v8  ;;  %741 = vmatprep.subr.bf16.mxu1 %v680_v8  ;;  %v686_v19 = vpack.c.bf16 %v151_v16, %v149_v15  ;;  %v688_v20 = vpack.c.bf16 %v156_v18, %v154_v17  ;;  %v153_v21 = vld [vmem:[#allocation6 + $0x60] sm:$0xff]  ;;  %v155_v22 = vld [vmem:[#allocation6 + $0x70] sm:$0xff]  ;;  %v158_v23 = vld [vmem:[#allocation6 + $0x88] sm:$0xff]  ;;  %p874_p7 = por %p873_p6, %p872_p5 }
  0x4f   :  { %v160_v24 = vld [vmem:[#allocation6 + $0x98] sm:$0xff]  ;;  %v690_v25 = vpack.c.bf16 %v155_v22, %v153_v21  ;;  %v157_v27 = vld [vmem:[#allocation6 + $0x80] sm:$0xff]  ;;  %v159_v28 = vld [vmem:[#allocation6 + $0x90] sm:$0xff] }
  0x50   :  { %v692_v26 = vpack.c.bf16 %v160_v24, %v158_v23  ;;  %v162_v29 = vld [vmem:[#allocation6 + $0xa8] sm:$0xff]  ;;  %v164_v30 = vld [vmem:[#allocation6 + $0xb8] sm:$0xff]  ;;  %v694_v31 = vpack.c.bf16 %v159_v28, %v157_v27  ;;  %v161_v33 = vld [vmem:[#allocation6 + $0xa0] sm:$0xff]  ;;  %p875_p8 = pnand %p874_p7, %p868_p4 }
  0x51   :  { %683 = vmatpush1.bf16.msra.mxu0 %v682_v13  ;;  %757 = vmatpush1.bf16.msra.mxu1 %v682_v13  ;;  %v696_v32 = vpack.c.bf16 %v164_v30, %v162_v29  ;;  %v163_v34 = vld [vmem:[#allocation6 + $0xb0] sm:$0xff]  ;;  %v166_v35 = vld [vmem:[#allocation6 + $0xc8] sm:$0xff]  ;;  %v168_v36 = vld [vmem:[#allocation6 + $0xd8] sm:$0xff] }
  0x52   :  { %685 = vmatprep.subr.bf16.mxu0 %v684_v14  ;;  %742 = vmatprep.subr.bf16.mxu1 %v684_v14  ;;  %v698_v37 = vpack.c.bf16 %v163_v34, %v161_v33  ;;  %v165_v38 = vld [vmem:[#allocation6 + $0xc0] sm:$0xff]  ;;  %v700_v39 = vpack.c.bf16 %v168_v36, %v166_v35  ;;  %v167_v40 = vld [vmem:[#allocation6 + $0xd0] sm:$0xff]  ;;  %v110_v41 = vld [vmem:[#allocation3 + $0x8] sm:$0xff] }
  0x53   :  { %v126_v42 = vld [vmem:[#allocation3 + $0x88] sm:$0xff]  ;;  %v172_v44 = vld [vmem:[#allocation6 + $0xf8] sm:$0xff]  ;;  %301 = vmatprep.mubr.f32.mxu0 %v110_v41  ;;  %v702_v45 = vpack.c.bf16 %v167_v40, %v165_v38  ;;  %v169_v47 = vld [vmem:[#allocation6 + $0xe0] sm:$0xff] }
  0x54   :  { %v170_v43 = vld [vmem:[#allocation6 + $0xe8] sm:$0xff]  ;;  %349 = vmatprep.mubr.f32.mxu1 %v126_v42  ;;  %v171_v48 = vld [vmem:[#allocation6 + $0xf0] sm:$0xff]  ;;  %v176_v50 = vld [vmem:[#allocation6 + $0x118] sm:$0xff] }
  0x55   :  { %687 = vmatpush1.bf16.msra.mxu0 %v686_v19  ;;  %758 = vmatpush1.bf16.msra.mxu1 %v686_v19  ;;  %v704_v46 = vpack.c.bf16 %v172_v44, %v170_v43  ;;  %v174_v49 = vld [vmem:[#allocation6 + $0x108] sm:$0xff]  ;;  %v706_v51 = vpack.c.bf16 %v171_v48, %v169_v47  ;;  %v173_v53 = vld [vmem:[#allocation6 + $0x100] sm:$0xff]  ;;  %v175_v54 = vld [vmem:[#allocation6 + $0x110] sm:$0xff] }
  0x56   :  { %689 = vmatprep.subr.bf16.mxu0 %v688_v20  ;;  %743 = vmatprep.subr.bf16.mxu1 %v688_v20  ;;  %v708_v52 = vpack.c.bf16 %v176_v50, %v174_v49  ;;  %v178_v55 = vld [vmem:[#allocation6 + $0x128] sm:$0xff]  ;;  %v180_v56 = vld [vmem:[#allocation6 + $0x138] sm:$0xff]  ;;  %v710_v57 = vpack.c.bf16 %v175_v54, %v173_v53  ;;  %v177_v59 = vld [vmem:[#allocation6 + $0x120] sm:$0xff] }
  0x57   :  { %v712_v58 = vpack.c.bf16 %v180_v56, %v178_v55  ;;  %v179_v60 = vld [vmem:[#allocation6 + $0x130] sm:$0xff]  ;;  %v182_v61 = vld [vmem:[#allocation6 + $0x148] sm:$0xff]  ;;  %v184_v62 = vld [vmem:[#allocation6 + $0x158] sm:$0xff] }
  0x58   :  { %v714_v63 = vpack.c.bf16 %v179_v60, %v177_v59  ;;  %v716_v0 = vpack.c.bf16 %v184_v62, %v182_v61  ;;  %v181_v1 = vld [vmem:[#allocation6 + $0x140] sm:$0xff]  ;;  %v183_v2 = vld [vmem:[#allocation6 + $0x150] sm:$0xff]  ;;  %v186_v3 = vld [vmem:[#allocation6 + $0x168] sm:$0xff] }
  0x59   :  { %691 = vmatpush1.bf16.msra.mxu0 %v690_v25  ;;  %759 = vmatpush1.bf16.msra.mxu1 %v690_v25  ;;  %v188_v4 = vld [vmem:[#allocation6 + $0x178] sm:$0xff]  ;;  %v718_v5 = vpack.c.bf16 %v183_v2, %v181_v1  ;;  %v185_v7 = vld [vmem:[#allocation6 + $0x160] sm:$0xff]  ;;  %v187_v8 = vld [vmem:[#allocation6 + $0x170] sm:$0xff] }
  0x5a   :  { %693 = vmatprep.subr.bf16.mxu0 %v692_v26  ;;  %744 = vmatprep.subr.bf16.mxu1 %v692_v26  ;;  %v720_v6 = vpack.c.bf16 %v188_v4, %v186_v3  ;;  %v190_v9 = vld [vmem:[#allocation6 + $0x188] sm:$0xff]  ;;  %v192_v10 = vld [vmem:[#allocation6 + $0x198] sm:$0xff]  ;;  %v722_v11 = vpack.c.bf16 %v187_v8, %v185_v7  ;;  %v189_v13 = vld [vmem:[#allocation6 + $0x180] sm:$0xff] }
  0x5b   :  { %v724_v12 = vpack.c.bf16 %v192_v10, %v190_v9  ;;  %v191_v14 = vld [vmem:[#allocation6 + $0x190] sm:$0xff]  ;;  %v194_v15 = vld [vmem:[#allocation6 + $0x1a8] sm:$0xff]  ;;  %v196_v16 = vld [vmem:[#allocation6 + $0x1b8] sm:$0xff] }
  0x5c   :  { %v726_v17 = vpack.c.bf16 %v191_v14, %v189_v13  ;;  %v728_v18 = vpack.c.bf16 %v196_v16, %v194_v15  ;;  %v193_v19 = vld [vmem:[#allocation6 + $0x1a0] sm:$0xff]  ;;  %v195_v20 = vld [vmem:[#allocation6 + $0x1b0] sm:$0xff]  ;;  %v198_v21 = vld [vmem:[#allocation6 + $0x1c8] sm:$0xff] }
  0x5d   :  { %695 = vmatpush1.bf16.msra.mxu0 %v694_v31  ;;  %760 = vmatpush1.bf16.msra.mxu1 %v694_v31  ;;  %v200_v22 = vld [vmem:[#allocation6 + $0x1d8] sm:$0xff]  ;;  %v730_v23 = vpack.c.bf16 %v195_v20, %v193_v19  ;;  %v197_v25 = vld [vmem:[#allocation6 + $0x1c0] sm:$0xff]  ;;  %v199_v26 = vld [vmem:[#allocation6 + $0x1d0] sm:$0xff] }
  0x5e   :  { %697 = vmatprep.subr.bf16.mxu0 %v696_v32  ;;  %745 = vmatprep.subr.bf16.mxu1 %v696_v32  ;;  %v732_v24 = vpack.c.bf16 %v200_v22, %v198_v21  ;;  %v202_v27 = vld [vmem:[#allocation6 + $0x1e8] sm:$0xff]  ;;  %v204_v28 = vld [vmem:[#allocation6 + $0x1f8] sm:$0xff]  ;;  %v734_v29 = vpack.c.bf16 %v199_v26, %v197_v25  ;;  %v201_v31 = vld [vmem:[#allocation6 + $0x1e0] sm:$0xff] }
  0x5f   :  { %v736_v30 = vpack.c.bf16 %v204_v28, %v202_v27  ;;  %v203_v32 = vld [vmem:[#allocation6 + $0x1f0] sm:$0xff]  ;;  %v109_v34 = vld [vmem:[#allocation3] sm:$0xff]  ;;  %v112_v36 = vld [vmem:[#allocation3 + $0x18] sm:$0xff] }
  0x60   :  { %v738_v33 = vpack.c.bf16 %v203_v32, %v201_v31  ;;  %v125_v35 = vld [vmem:[#allocation3 + $0x80] sm:$0xff]  ;;  %v111_v38 = vld [vmem:[#allocation3 + $0x10] sm:$0xff]  ;;  %v114_v40 = vld [vmem:[#allocation3 + $0x28] sm:$0xff] }
  0x61   :  { %699 = vmatpush1.bf16.msra.mxu0 %v698_v37  ;;  %761 = vmatpush1.bf16.msra.mxu1 %v698_v37  ;;  %v128_v37 = vld [vmem:[#allocation3 + $0x98] sm:$0xff]  ;;  %v130_v41 = vld [vmem:[#allocation3 + $0xa8] sm:$0xff]  ;;  %v113_v42 = vld [vmem:[#allocation3 + $0x20] sm:$0xff] }
  0x62   :  { %701 = vmatprep.subr.bf16.mxu0 %v700_v39  ;;  %746 = vmatprep.subr.bf16.mxu1 %v700_v39  ;;  %v127_v39 = vld [vmem:[#allocation3 + $0x90] sm:$0xff]  ;;  %v129_v43 = vld [vmem:[#allocation3 + $0xa0] sm:$0xff]  ;;  %v116_v44 = vld [vmem:[#allocation3 + $0x38] sm:$0xff] }
  0x63   :  { %v131_v47 = vld [vmem:[#allocation3 + $0xb0] sm:$0xff]  ;;  %v118_v48 = vld [vmem:[#allocation3 + $0x48] sm:$0xff]  ;;  %v117_v50 = vld [vmem:[#allocation3 + $0x40] sm:$0xff] }
  0x64   :  { %v134_v49 = vld [vmem:[#allocation3 + $0xc8] sm:$0xff]  ;;  %v136_v53 = vld [vmem:[#allocation3 + $0xd8] sm:$0xff]  ;;  %v119_v54 = vld [vmem:[#allocation3 + $0x50] sm:$0xff] }
  0x65   :  { %703 = vmatpush1.bf16.msra.mxu0 %v702_v45  ;;  %762 = vmatpush1.bf16.msra.mxu1 %v702_v45  ;;  %v132_v45 = vld [vmem:[#allocation3 + $0xb8] sm:$0xff]  ;;  %v135_v55 = vld [vmem:[#allocation3 + $0xd0] sm:$0xff]  ;;  %v122_v56 = vld [vmem:[#allocation3 + $0x68] sm:$0xff] }
  0x66   :  { %705 = vmatprep.subr.bf16.mxu0 %v704_v46  ;;  %747 = vmatprep.subr.bf16.mxu1 %v704_v46  ;;  %v115_v46 = vld [vmem:[#allocation3 + $0x30] sm:$0xff]  ;;  %v137_v59 = vld [vmem:[#allocation3 + $0xe0] sm:$0xff]  ;;  %v124_v60 = vld [vmem:[#allocation3 + $0x78] sm:$0xff] }
  0x67   :  { %v140_v61 = vld [vmem:[#allocation3 + $0xf8] sm:$0xff]  ;;  %v123_v62 = vld [vmem:[#allocation3 + $0x70] sm:$0xff]  ;;  %v529_v1 = vld [vmem:[#allocation9] sm:$0xff] }
  0x68   :  { %v513_v2 = vld [vmem:[#allocation8 + $0x80] sm:$0xff]  ;;  %v498_v4 = vld [vmem:[#allocation8 + $0x8] sm:$0xff]  ;;  %v499_v10 = vld [vmem:[#allocation8 + $0x10] sm:$0xff] }
  0x69   :  { %707 = vmatpush1.bf16.msra.mxu0 %v706_v51  ;;  %763 = vmatpush1.bf16.msra.mxu1 %v706_v51  ;;  %v133_v51 = vld [vmem:[#allocation3 + $0xc0] sm:$0xff]  ;;  %v546_v7 = vld [vmem:[#allocation9 + $0x88] sm:$0xff]  ;;  %v515_v14 = vld [vmem:[#allocation8 + $0x90] sm:$0xff] }
  0x6a   :  { %709 = vmatprep.subr.bf16.mxu0 %v708_v52  ;;  %748 = vmatprep.subr.bf16.mxu1 %v708_v52  ;;  %v120_v52 = vld [vmem:[#allocation3 + $0x58] sm:$0xff]  ;;  %v545_v3 = vld [vmem:[#allocation9 + $0x80] sm:$0xff]  ;;  %v547_v15 = vld [vmem:[#allocation9 + $0x90] sm:$0xff] }
  0x6b   :  { %v577_v9 = vadd.f32 %v545_v3, %v513_v2  ;;  %v500_v16 = vld [vmem:[#allocation8 + $0x18] sm:$0xff]  ;;  %v579_v27 = vadd.f32 %v547_v15, %v515_v14  ;;  %v501_v28 = vld [vmem:[#allocation8 + $0x20] sm:$0xff]  ;;  %v522_v14 = vld [vmem:[#allocation8 + $0xc8] sm:$0xff] }
  0x6c   :  { %v548_v19 = vld [vmem:[#allocation9 + $0x98] sm:$0xff]  ;;  %v554_v15 = vld [vmem:[#allocation9 + $0xc8] sm:$0xff] }
  0x6d   :  { %711 = vmatpush1.bf16.msra.mxu0 %v710_v57  ;;  %764 = vmatpush1.bf16.msra.mxu1 %v710_v57  ;;  %v138_v57 = vld [vmem:[#allocation3 + $0xe8] sm:$0xff] }
  0x6e   :  { %713 = vmatprep.subr.bf16.mxu0 %v712_v58  ;;  %749 = vmatprep.subr.bf16.mxu1 %v712_v58  ;;  %v121_v58 = vld [vmem:[#allocation3 + $0x60] sm:$0xff] }
  0x71   :  { %715 = vmatpush1.bf16.msra.mxu0 %v714_v63  ;;  %765 = vmatpush1.bf16.msra.mxu1 %v714_v63  ;;  %v139_v63 = vld [vmem:[#allocation3 + $0xf0] sm:$0xff] }
  0x72   :  { %717 = vmatprep.subr.bf16.mxu0 %v716_v0  ;;  %750 = vmatprep.subr.bf16.mxu1 %v716_v0  ;;  %v497_v0 = vld [vmem:[#allocation8] sm:$0xff] }
  0x73   :  { %v561_v8 = vadd.f32 %v529_v1, %v497_v0 }
  0x75   :  { %719 = vmatpush1.bf16.msra.mxu0 %v718_v5  ;;  %766 = vmatpush1.bf16.msra.mxu1 %v718_v5  ;;  %v530_v5 = vld [vmem:[#allocation9 + $0x8] sm:$0xff] }
  0x76   :  { %721 = vmatprep.subr.bf16.mxu0 %v720_v6  ;;  %751 = vmatprep.subr.bf16.mxu1 %v720_v6  ;;  %v514_v6 = vld [vmem:[#allocation8 + $0x88] sm:$0xff] }
  0x77   :  { %v578_v13 = vadd.f32 %v546_v7, %v514_v6 }
  0x79   :  { %723 = vmatpush1.bf16.msra.mxu0 %v722_v11  ;;  %767 = vmatpush1.bf16.msra.mxu1 %v722_v11  ;;  %v531_v11 = vld [vmem:[#allocation9 + $0x10] sm:$0xff] }
  0x7a   :  { %725 = vmatprep.subr.bf16.mxu0 %v724_v12  ;;  %752 = vmatprep.subr.bf16.mxu1 %v724_v12  ;;  %v562_v12 = vadd.f32 %v530_v5, %v498_v4  ;;  %v563_v26 = vadd.f32 %v531_v11, %v499_v10  ;;  %v505_v4 = vld [vmem:[#allocation8 + $0x40] sm:$0xff] }
  0x7b   :  { %v537_v5 = vld [vmem:[#allocation9 + $0x40] sm:$0xff] }
  0x7c   :  { %v521_v10 = vld [vmem:[#allocation8 + $0xc0] sm:$0xff] }
  0x7d   :  { %727 = vmatpush1.bf16.msra.mxu0 %v726_v17  ;;  %768 = vmatpush1.bf16.msra.mxu1 %v726_v17  ;;  %v532_v17 = vld [vmem:[#allocation9 + $0x18] sm:$0xff]  ;;  %v553_v11 = vld [vmem:[#allocation9 + $0xc0] sm:$0xff] }
  0x7e   :  { %729 = vmatprep.subr.bf16.mxu0 %v728_v18  ;;  %753 = vmatprep.subr.bf16.mxu1 %v728_v18  ;;  %v516_v18 = vld [vmem:[#allocation8 + $0x98] sm:$0xff]  ;;  %v564_v32 = vadd.f32 %v532_v17, %v500_v16 }
  0x81   :  { %731 = vmatpush1.bf16.msra.mxu0 %v730_v23  ;;  %769 = vmatpush1.bf16.msra.mxu1 %v730_v23 }
  0x82   :  { %733 = vmatprep.subr.bf16.mxu0 %v732_v24  ;;  %754 = vmatprep.subr.bf16.mxu1 %v732_v24 }
  0x85   :  { %735 = vmatpush1.bf16.msra.mxu0 %v734_v29  ;;  %770 = vmatpush1.bf16.msra.mxu1 %v734_v29  ;;  %v533_v29 = vld [vmem:[#allocation9 + $0x20] sm:$0xff] }
  0x86   :  { %737 = vmatprep.subr.bf16.mxu0 %v736_v30  ;;  %755 = vmatprep.subr.bf16.mxu1 %v736_v30 }
  0x89   :  { %739 = vmatpush1.bf16.msra.mxu0 %v738_v33  ;;  %771 = vmatpush1.bf16.msra.mxu1 %v738_v33  ;;  %v580_v33 = vadd.f32 %v548_v19, %v516_v18 }
  0x8c   :  { %302 = vmatmul.mubr.f32.vlgmr.msra.gmra.mrb[0].mxu0 %v109_v34  ;;  %350 = vmatmul.mubr.f32.vlgmr.msra.gmra.mrb[0].mxu1 %v125_v35  ;;  %v517_v34 = vld [vmem:[#allocation8 + $0xa0] sm:$0xff] }
  0x8d   :  { %307 = vmatprep.mubr.f32.mxu0 %v112_v36  ;;  %355 = vmatprep.mubr.f32.mxu1 %v128_v37  ;;  %v549_v35 = vld [vmem:[#allocation9 + $0xa0] sm:$0xff]  ;;  %v502_v36 = vld [vmem:[#allocation8 + $0x28] sm:$0xff] }
  0x8e   :  { %v534_v37 = vld [vmem:[#allocation9 + $0x28] sm:$0xff] }
  0x90   :  { %308 = vmatmul.mubr.f32.gmra.mrb[2].mxu0 %v111_v38  ;;  %356 = vmatmul.mubr.f32.gmra.mrb[2].mxu1 %v127_v39  ;;  %v518_v38 = vld [vmem:[#allocation8 + $0xa8] sm:$0xff] }
  0x91   :  { %313 = vmatprep.mubr.f32.mxu0 %v114_v40  ;;  %361 = vmatprep.mubr.f32.mxu1 %v130_v41  ;;  %v550_v39 = vld [vmem:[#allocation9 + $0xa8] sm:$0xff] }
  0x94   :  { %314 = vmatmul.mubr.f32.gmra.mrb[4].mxu0 %v113_v42  ;;  %362 = vmatmul.mubr.f32.gmra.mrb[4].mxu1 %v129_v43 }
  0x95   :  { %319 = vmatprep.mubr.f32.mxu0 %v116_v44  ;;  %367 = vmatprep.mubr.f32.mxu1 %v132_v45 }
  0x98   :  { %320 = vmatmul.mubr.f32.gmra.mrb[6].mxu0 %v115_v46  ;;  %368 = vmatmul.mubr.f32.gmra.mrb[6].mxu1 %v131_v47  ;;  %v565_v46 = vadd.f32 %v533_v29, %v501_v28  ;;  %v581_v47 = vadd.f32 %v549_v35, %v517_v34  ;;  %v586_v29 = vadd.f32 %v554_v15, %v522_v14  ;;  %v524_v34 = vld [vmem:[#allocation8 + $0xd8] sm:$0xff] }
  0x99   :  { %325 = vmatprep.mubr.f32.mxu0 %v118_v48  ;;  %373 = vmatprep.mubr.f32.mxu1 %v134_v49  ;;  %v503_v48 = vld [vmem:[#allocation8 + $0x30] sm:$0xff]  ;;  %v556_v35 = vld [vmem:[#allocation9 + $0xd8] sm:$0xff] }
  0x9a   :  { %v535_v49 = vld [vmem:[#allocation9 + $0x30] sm:$0xff] }
  0x9b   :  { %v567_v2 = vadd.f32 %v535_v49, %v503_v48  ;;  %v588_v49 = vadd.f32 %v556_v35, %v524_v34 }
  0x9c   :  { %326 = vmatmul.mubr.f32.gmra.mrb[8].mxu0 %v117_v50  ;;  %374 = vmatmul.mubr.f32.gmra.mrb[8].mxu1 %v133_v51 }
  0x9d   :  { %331 = vmatprep.mubr.f32.mxu0 %v120_v52  ;;  %379 = vmatprep.mubr.f32.mxu1 %v136_v53  ;;  %v566_v52 = vadd.f32 %v534_v37, %v502_v36  ;;  %v582_v53 = vadd.f32 %v550_v39, %v518_v38 }
  0xa0   :  { %332 = vmatmul.mubr.f32.gmra.mrb[10].mxu0 %v119_v54  ;;  %380 = vmatmul.mubr.f32.gmra.mrb[10].mxu1 %v135_v55  ;;  %v519_v54 = vld [vmem:[#allocation8 + $0xb0] sm:$0xff] }
  0xa1   :  { %337 = vmatprep.mubr.f32.mxu0 %v122_v56  ;;  %385 = vmatprep.mubr.f32.mxu1 %v138_v57  ;;  %v551_v55 = vld [vmem:[#allocation9 + $0xb0] sm:$0xff]  ;;  %v504_v56 = vld [vmem:[#allocation8 + $0x38] sm:$0xff] }
  0xa2   :  { %v536_v57 = vld [vmem:[#allocation9 + $0x38] sm:$0xff]  ;;  %v583_v3 = vadd.f32 %v551_v55, %v519_v54  ;;  %v526_v54 = vld [vmem:[#allocation8 + $0xe8] sm:$0xff] }
  0xa3   :  { %v558_v55 = vld [vmem:[#allocation9 + $0xe8] sm:$0xff] }
  0xa4   :  { %338 = vmatmul.mubr.f32.gmra.mrb[12].mxu0 %v121_v58  ;;  %386 = vmatmul.mubr.f32.gmra.mrb[12].mxu1 %v137_v59  ;;  %v520_v58 = vld [vmem:[#allocation8 + $0xb8] sm:$0xff] }
  0xa5   :  { %343 = vmatprep.mubr.f32.mxu0 %v124_v60  ;;  %391 = vmatprep.mubr.f32.mxu1 %v140_v61  ;;  %v552_v59 = vld [vmem:[#allocation9 + $0xb8] sm:$0xff] }
  0xa8   :  { %344 = vmatmul.mubr.f32.gmra.mrb[14].mxu0 %v123_v62  ;;  %392 = vmatmul.mubr.f32.gmra.mrb[14].mxu1 %v139_v63 }
 0x15f   :  { %v303_v20 = vpop.f32.mrb[0].mxu0  ;;  %v351_v21 = vpop.f32.mrb[0].mxu1 }
 0x160   :  { %v593_v22 = vadd.f32 %v561_v8, %v303_v20  ;;  %v609_v23 = vadd.f32 %v577_v9, %v351_v21  ;;  %v305_v24 = vpop.f32.mrb[1].mxu0  ;;  %v353_v25 = vpop.f32.mrb[1].mxu1  ;;  %v568_v8 = vadd.f32 %v536_v57, %v504_v56  ;;  %v584_v9 = vadd.f32 %v552_v59, %v520_v58 }
 0x161   :  { %v594_v30 = vadd.f32 %v562_v12, %v305_v24  ;;  %v610_v31 = vadd.f32 %v578_v13, %v353_v25  ;;  %v506_v12 = vld [vmem:[#allocation8 + $0x48] sm:$0xff]  ;;  %v507_v24 = vld [vmem:[#allocation8 + $0x50] sm:$0xff] }
 0x162   :  { %625 = vst [vmem:[#allocation11] sm:$0xff] %v593_v22  ;;  %641 = vst [vmem:[#allocation11 + $0x80] sm:$0xff] %v609_v23  ;;  %v538_v13 = vld [vmem:[#allocation9 + $0x48] sm:$0xff]  ;;  %v569_v22 = vadd.f32 %v537_v5, %v505_v4  ;;  %v585_v23 = vadd.f32 %v553_v11, %v521_v10  ;;  %v539_v25 = vld [vmem:[#allocation9 + $0x50] sm:$0xff]  ;;  %v590_v5 = vadd.f32 %v558_v55, %v526_v54 }
 0x163   :  { %626 = vst [vmem:[#allocation11 + $0x8] sm:$0xff] %v594_v30  ;;  %642 = vst [vmem:[#allocation11 + $0x88] sm:$0xff] %v610_v31  ;;  %v309_v40 = vpop.f32.mrb[2].mxu0  ;;  %v357_v41 = vpop.f32.mrb[2].mxu1  ;;  %v570_v28 = vadd.f32 %v538_v13, %v506_v12  ;;  %v523_v30 = vld [vmem:[#allocation8 + $0xd0] sm:$0xff]  ;;  %v528_v10 = vld [vmem:[#allocation8 + $0xf8] sm:$0xff] }
 0x164   :  { %v595_v42 = vadd.f32 %v563_v26, %v309_v40  ;;  %v611_v43 = vadd.f32 %v579_v27, %v357_v41  ;;  %v311_v44 = vpop.f32.mrb[3].mxu0  ;;  %v359_v45 = vpop.f32.mrb[3].mxu1  ;;  %v555_v31 = vld [vmem:[#allocation9 + $0xd0] sm:$0xff]  ;;  %v560_v11 = vld [vmem:[#allocation9 + $0xf8] sm:$0xff] }
 0x165   :  { %v596_v50 = vadd.f32 %v564_v32, %v311_v44  ;;  %v612_v51 = vadd.f32 %v580_v33, %v359_v45  ;;  %v508_v32 = vld [vmem:[#allocation8 + $0x58] sm:$0xff]  ;;  %v509_v44 = vld [vmem:[#allocation8 + $0x60] sm:$0xff] }
 0x166   :  { %627 = vst [vmem:[#allocation11 + $0x10] sm:$0xff] %v595_v42  ;;  %643 = vst [vmem:[#allocation11 + $0x90] sm:$0xff] %v611_v43  ;;  %v540_v33 = vld [vmem:[#allocation9 + $0x58] sm:$0xff]  ;;  %v571_v42 = vadd.f32 %v539_v25, %v507_v24  ;;  %v587_v43 = vadd.f32 %v555_v31, %v523_v30  ;;  %v541_v45 = vld [vmem:[#allocation9 + $0x60] sm:$0xff] }
 0x167   :  { %628 = vst [vmem:[#allocation11 + $0x18] sm:$0xff] %v596_v50  ;;  %644 = vst [vmem:[#allocation11 + $0x98] sm:$0xff] %v612_v51  ;;  %v315_v60 = vpop.f32.mrb[4].mxu0  ;;  %v363_v61 = vpop.f32.mrb[4].mxu1  ;;  %v572_v48 = vadd.f32 %v540_v33, %v508_v32  ;;  %v525_v50 = vld [vmem:[#allocation8 + $0xe0] sm:$0xff] }
 0x168   :  { %v597_v62 = vadd.f32 %v565_v46, %v315_v60  ;;  %v613_v63 = vadd.f32 %v581_v47, %v363_v61  ;;  %v317_v0 = vpop.f32.mrb[5].mxu0  ;;  %v365_v1 = vpop.f32.mrb[5].mxu1  ;;  %v557_v51 = vld [vmem:[#allocation9 + $0xe0] sm:$0xff] }
 0x169   :  { %v598_v6 = vadd.f32 %v566_v52, %v317_v0  ;;  %v614_v7 = vadd.f32 %v582_v53, %v365_v1  ;;  %v510_v52 = vld [vmem:[#allocation8 + $0x68] sm:$0xff]  ;;  %v511_v0 = vld [vmem:[#allocation8 + $0x70] sm:$0xff] }
 0x16a   :  { %629 = vst [vmem:[#allocation11 + $0x20] sm:$0xff] %v597_v62  ;;  %645 = vst [vmem:[#allocation11 + $0xa0] sm:$0xff] %v613_v63  ;;  %v542_v53 = vld [vmem:[#allocation9 + $0x68] sm:$0xff]  ;;  %v573_v62 = vadd.f32 %v541_v45, %v509_v44  ;;  %v589_v63 = vadd.f32 %v557_v51, %v525_v50  ;;  %v543_v1 = vld [vmem:[#allocation9 + $0x70] sm:$0xff] }
 0x16b   :  { %630 = vst [vmem:[#allocation11 + $0x28] sm:$0xff] %v598_v6  ;;  %646 = vst [vmem:[#allocation11 + $0xa8] sm:$0xff] %v614_v7  ;;  %v321_v16 = vpop.f32.mrb[6].mxu0  ;;  %v369_v17 = vpop.f32.mrb[6].mxu1  ;;  %v574_v4 = vadd.f32 %v542_v53, %v510_v52  ;;  %v527_v6 = vld [vmem:[#allocation8 + $0xf0] sm:$0xff] }
 0x16c   :  { %v599_v18 = vadd.f32 %v567_v2, %v321_v16  ;;  %v615_v19 = vadd.f32 %v583_v3, %v369_v17  ;;  %v323_v20 = vpop.f32.mrb[7].mxu0  ;;  %v371_v21 = vpop.f32.mrb[7].mxu1  ;;  %v559_v7 = vld [vmem:[#allocation9 + $0xf0] sm:$0xff] }
 0x16d   :  { %v600_v26 = vadd.f32 %v568_v8, %v323_v20  ;;  %v616_v27 = vadd.f32 %v584_v9, %v371_v21  ;;  %v512_v8 = vld [vmem:[#allocation8 + $0x78] sm:$0xff] }
 0x16e   :  { %631 = vst [vmem:[#allocation11 + $0x30] sm:$0xff] %v599_v18  ;;  %647 = vst [vmem:[#allocation11 + $0xb0] sm:$0xff] %v615_v19  ;;  %v544_v9 = vld [vmem:[#allocation9 + $0x78] sm:$0xff]  ;;  %v575_v18 = vadd.f32 %v543_v1, %v511_v0  ;;  %v591_v19 = vadd.f32 %v559_v7, %v527_v6 }
 0x16f   :  { %632 = vst [vmem:[#allocation11 + $0x38] sm:$0xff] %v600_v26  ;;  %648 = vst [vmem:[#allocation11 + $0xb8] sm:$0xff] %v616_v27  ;;  %v327_v36 = vpop.f32.mrb[8].mxu0  ;;  %v375_v37 = vpop.f32.mrb[8].mxu1 }
 0x170   :  { %v601_v38 = vadd.f32 %v569_v22, %v327_v36  ;;  %v617_v39 = vadd.f32 %v585_v23, %v375_v37  ;;  %v329_v40 = vpop.f32.mrb[9].mxu0  ;;  %v377_v41 = vpop.f32.mrb[9].mxu1  ;;  %v576_v22 = vadd.f32 %v544_v9, %v512_v8  ;;  %v592_v23 = vadd.f32 %v560_v11, %v528_v10 }
 0x171   :  { %v602_v46 = vadd.f32 %v570_v28, %v329_v40  ;;  %v618_v47 = vadd.f32 %v586_v29, %v377_v41 }
 0x172   :  { %633 = vst [vmem:[#allocation11 + $0x40] sm:$0xff] %v601_v38  ;;  %649 = vst [vmem:[#allocation11 + $0xc0] sm:$0xff] %v617_v39 }
 0x173   :  { %634 = vst [vmem:[#allocation11 + $0x48] sm:$0xff] %v602_v46  ;;  %650 = vst [vmem:[#allocation11 + $0xc8] sm:$0xff] %v618_v47  ;;  %v333_v56 = vpop.f32.mrb[10].mxu0  ;;  %v381_v57 = vpop.f32.mrb[10].mxu1 }
 0x174   :  { %v603_v58 = vadd.f32 %v571_v42, %v333_v56  ;;  %v619_v59 = vadd.f32 %v587_v43, %v381_v57  ;;  %v335_v60 = vpop.f32.mrb[11].mxu0  ;;  %v383_v61 = vpop.f32.mrb[11].mxu1 }
 0x175   :  { %v604_v2 = vadd.f32 %v572_v48, %v335_v60  ;;  %v620_v3 = vadd.f32 %v588_v49, %v383_v61 }
 0x176   :  { %635 = vst [vmem:[#allocation11 + $0x50] sm:$0xff] %v603_v58  ;;  %651 = vst [vmem:[#allocation11 + $0xd0] sm:$0xff] %v619_v59 }
 0x177   :  { %636 = vst [vmem:[#allocation11 + $0x58] sm:$0xff] %v604_v2  ;;  %652 = vst [vmem:[#allocation11 + $0xd8] sm:$0xff] %v620_v3  ;;  %v339_v12 = vpop.f32.mrb[12].mxu0  ;;  %v387_v13 = vpop.f32.mrb[12].mxu1 }
 0x178   :  { %v605_v14 = vadd.f32 %v573_v62, %v339_v12  ;;  %v621_v15 = vadd.f32 %v589_v63, %v387_v13  ;;  %v341_v16 = vpop.f32.mrb[13].mxu0  ;;  %v389_v17 = vpop.f32.mrb[13].mxu1 }
 0x179   :  { %v606_v20 = vadd.f32 %v574_v4, %v341_v16  ;;  %v622_v21 = vadd.f32 %v590_v5, %v389_v17 }
 0x17a   :  { %637 = vst [vmem:[#allocation11 + $0x60] sm:$0xff] %v605_v14  ;;  %653 = vst [vmem:[#allocation11 + $0xe0] sm:$0xff] %v621_v15 }
 0x17b   :  { %638 = vst [vmem:[#allocation11 + $0x68] sm:$0xff] %v606_v20  ;;  %654 = vst [vmem:[#allocation11 + $0xe8] sm:$0xff] %v622_v21  ;;  %v345_v24 = vpop.f32.mrb[14].mxu0  ;;  %v393_v25 = vpop.f32.mrb[14].mxu1 }
 0x17c   :  { %v607_v26 = vadd.f32 %v575_v18, %v345_v24  ;;  %v623_v27 = vadd.f32 %v591_v19, %v393_v25  ;;  %v347_v28 = vpop.f32.mrb[15].mxu0  ;;  %v395_v29 = vpop.f32.mrb[15].mxu1 }
 0x17d   :  { %v608_v30 = vadd.f32 %v576_v22, %v347_v28  ;;  %v624_v31 = vadd.f32 %v592_v23, %v395_v29 }
 0x17e   :  { %639 = vst [vmem:[#allocation11 + $0x70] sm:$0xff] %v607_v26  ;;  %655 = vst [vmem:[#allocation11 + $0xf0] sm:$0xff] %v623_v27 }
 0x17f   :  { %640 = vst [vmem:[#allocation11 + $0x78] sm:$0xff] %v608_v30  ;;  %656 = vst [vmem:[#allocation11 + $0xf8] sm:$0xff] %v624_v31 }
 0x180   :  { %878 = shalt.err (!%p875_p8)
}
 0x181   :  { %s879_s15 = scalar_lea.hbm %s1022_s4, 4096 }
 0x182   :  { %p880_p9 = scmp.ne.s32.totalorder %s1022_s4, %s879_s15  ;;  %p883_p10 = scmp.lt.u32.totalorder %s879_s15, %s1022_s4 }
 0x184   :  { %p885_p11 = pnand %p883_p10, %p880_p9 }
 0x186   :  { %888 = shalt.err (!%p885_p11)
}
 0x187   :  { %668 = dma.vmem_to_hbm [thread:$0]  %s663_s12, 4096, %s1022_s4, [#allocation5], %s899_s27, %s899_s27, %s900_s28  }
 0x188   :  { %895 = dma.done.wait [#allocation5], 4096  }
 0x189   :  { %896 = vsyncadd [#allocation5], 4294963200 }
 0x18a   :  { %672 = vsyncpa [#allocation4], 1 }
 0x18b   :  { %673 = vsyncpa [#allocation7], 1 }
 0x18c   :  { %674 = vsyncpa [#allocation10], 1 }
 0x18d   :  { %675 = vsyncpa [#allocation5], 1 }

</bundles_post_ra>
